<compile_context>
chip_gen: v6e
topology: v6e:2x2x1
jax: 0.10.0
libtpu: 0.0.40
codegen_flags: <defaults>
</compile_context>

<pallas_src>
import math

import jax
import jax.numpy as jnp
from jax import lax
from jax.experimental import pallas as pl
from jax.experimental.pallas import tpu as pltpu


# ---------- shared math helpers (usable inside and outside the kernel) ----------

def _l2_normalize(x, axis, eps=1e-12):
    # matches torch.nn.functional.normalize: x / max(||x||_2, eps)
    # rsqrt(max(sumsq, eps^2)) == 1 / max(||x||, eps)  (sqrt is monotone),
    # and rsqrt lands on the EUP slot instead of the VALU divide path.
    sumsq = jnp.sum(x * x, axis=axis, keepdims=True)
    return x * lax.rsqrt(jnp.maximum(sumsq, eps * eps))


def _layer_norm(x, gamma, beta, eps=1e-12):
    # matches nn.LayerNorm (biased variance), eps=1e-12
    mean = jnp.mean(x, axis=-1, keepdims=True)
    var = jnp.mean((x - mean) ** 2, axis=-1, keepdims=True)
    return (x - mean) * lax.rsqrt(var + eps) * gamma + beta


def _gelu(x):
    # exact (erf-based) GELU, matching nn.GELU() default
    return 0.5 * x * (1.0 + lax.erf(x * (1.0 / math.sqrt(2.0))))


# ---------- Pallas kernel: Bt batch elements per grid step ----------

def ea_attention_kernel(x_ref, wqk_ref, wp_ref, wf_ref, vecs_ref, out_ref):
    Bt, S, H = x_ref.shape
    scale = H ** (-0.5)

    x3 = x_ref[...]                                                   # (Bt, S, H)
    x2 = x3.reshape(Bt * S, H)                                        # leading-dim collapse (free)

    vecs = vecs_ref[...]                                              # (9, H)
    bq = vecs[0:1, :]
    bk = vecs[1:2, :]
    wg = vecs[2:3, :]
    bp = vecs[3:4, :]
    g1 = vecs[4:5, :]
    b1 = vecs[5:6, :]
    bf = vecs[6:7, :]
    g2 = vecs[7:8, :]
    b2 = vecs[8:9, :]

    # fused to_query / to_key: one MXU pass over x for both projections.
    # TODO(synk): for v6e/v7x, casting x / weights to bf16 (keeping f32
    # accumulation) roughly doubles MXU throughput; kept f32 to preserve
    # strict 1e-4 parity with the f32 reference.
    qk = jnp.dot(x2, wqk_ref[...], preferred_element_type=jnp.float32)  # (Bt*S, 2H)
    q = qk[:, :H] + bq
    k = qk[:, H:] + bk

    # F.normalize over the hidden dim
    q = _l2_normalize(q, axis=-1)
    k = _l2_normalize(k, axis=-1)

    # GELU (exact, erf-based -> EUP)
    q = _gelu(q)

    # per-batch-element reductions
    q3 = q.reshape(Bt, S, H)
    k3 = k.reshape(Bt, S, H)

    # query_weight = query @ w_g  -> (Bt, S, 1)   (w_g passed as (1, H))
    qw = jnp.sum(q3 * wg, axis=-1, keepdims=True)
    A = qw * scale
    # F.normalize over the sequence dim (dim=1 of (B, S, 1))
    A = _l2_normalize(A, axis=1)

    # G = sum over seq of A * query, broadcast back to (Bt, S, H)
    G = jnp.sum(A * q3, axis=1, keepdims=True)                        # (Bt, 1, H)
    gk = (G * k3).reshape(Bt * S, H)

    # Proj(G * key)
    h = jnp.dot(gk, wp_ref[...], preferred_element_type=jnp.float32) + bp

    # fl(hidden * LNorm(input))
    ln_x = _layer_norm(x2, g1, b1)
    h = jnp.dot(h * ln_x, wf_ref[...], preferred_element_type=jnp.float32) + bf

    # TODO(synk): attention dropout omitted (inference-mode identity)
    out = _layer_norm(h + x2, g2, b2)
    out_ref[...] = out.reshape(Bt, S, H)


def _pick_batch_tile(B, S, H, block_b):
    """Largest batch tile <= block_b that divides B and fits a conservative
    VMEM budget (~24 MiB working set: ~20 live (S, H) f32 slabs per batch
    element incl. double-buffered in/out tiles — safe on v7x's smaller VMEM)."""
    budget_bytes = 24 << 20
    per_elem_bytes = 20 * S * H * 4
    bt_cap = max(1, budget_bytes // max(per_elem_bytes, 1))
    bt = max(1, min(B, block_b, bt_cap))
    while B % bt:
        bt -= 1
    return bt


def ea_attention(x, params, block_b=32):
    """x: (B, S, H) f32. params: the 13 unfused parameters (see reference)."""
    B, S, H = x.shape
    Wq, bq, Wk, bk, wg, Wp, bp, g1, b1, Wf, bf, g2, b2 = params

    # Host-side packing (done once under jit): fuse Wq|Wk and the small vectors.
    Wqk = jnp.concatenate([Wq, Wk], axis=1)                           # (H, 2H)
    vecs = jnp.concatenate([bq, bk, wg, bp, g1, b1, bf, g2, b2], axis=0)  # (9, H)

    bt = _pick_batch_tile(B, S, H, block_b)
    grid = (B // bt,)

    in_specs = [
        pl.BlockSpec((bt, S, H), lambda b: (b, 0, 0)),                # x
        pl.BlockSpec((H, 2 * H), lambda b: (0, 0)),                   # Wqk
        pl.BlockSpec((H, H), lambda b: (0, 0)),                       # Wp
        pl.BlockSpec((H, H), lambda b: (0, 0)),                       # Wf
        pl.BlockSpec((9, H), lambda b: (0, 0)),                       # packed vectors
    ]

    flops = 8 * B * S * H * H                                         # 3 matmuls (Wqk counts double)
    transcendentals = B * S * H + 6 * B * S                           # erf + rsqrts
    bytes_accessed = 2 * B * S * H * 4 + 4 * H * H * 4

    return pl.pallas_call(
        ea_attention_kernel,
        out_shape=jax.ShapeDtypeStruct((B, S, H), x.dtype),
        grid_spec=pltpu.PrefetchScalarGridSpec(
            num_scalar_prefetch=0,
            grid=grid,
            in_specs=in_specs,
            out_specs=pl.BlockSpec((bt, S, H), lambda b: (b, 0, 0)),
        ),
        compiler_params=pltpu.CompilerParams(
            dimension_semantics=("parallel",)),
        cost_estimate=pl.CostEstimate(
            flops=flops,
            transcendentals=transcendentals,
            bytes_accessed=bytes_accessed),
    )(x, Wqk, Wp, Wf, vecs)


# ---------- pure-JAX reference (same math, whole batch) ----------

def ea_attention_ref(x, params):
    Wq, bq, Wk, bk, wg, Wp, bp, g1, b1, Wf, bf, g2, b2 = params
    H = x.shape[-1]
    q = x @ Wq + bq
    k = x @ Wk + bk
    q = _l2_normalize(q, axis=-1)
    k = _l2_normalize(k, axis=-1)
    q = _gelu(q)
    qw = jnp.sum(q * wg, axis=-1, keepdims=True)                      # (B, S, 1)
    A = qw * (H ** (-0.5))
    A = _l2_normalize(A, axis=1)
    G = jnp.sum(A * q, axis=1, keepdims=True)                         # (B, 1, H)
    h = (G * k) @ Wp + bp
    ln_x = _layer_norm(x, g1, b1)
    h = (h * ln_x) @ Wf + bf
    return _layer_norm(h + x, g2, b2)


if __name__ == "__main__":
    B, S, H = 2, 8, 32

    key = jax.random.PRNGKey(0)
    kx, k0, k1, k2, k3, k4, k5, k6, k7, k8 = jax.random.split(key, 10)

    x = jax.random.normal(kx, (B, S, H), jnp.float32)

    s = 1.0 / math.sqrt(H)

    def rnd(k, shape, scale):
        return (jax.random.normal(k, shape, jnp.float32) * scale).astype(jnp.float32)

    Wq = rnd(k0, (H, H), s); bq = rnd(k1, (1, H), s)
    Wk = rnd(k2, (H, H), s); bk = rnd(k3, (1, H), s)
    wg = rnd(k4, (1, H), 1.0)                 # torch w_g is (H, 1); stored transposed
    Wp = rnd(k5, (H, H), s); bp = rnd(k6, (1, H), s)
    g1 = jnp.ones((1, H), jnp.float32); b1 = jnp.zeros((1, H), jnp.float32)
    Wf = rnd(k7, (H, H), s); bf = rnd(k8, (1, H), s)
    g2 = jnp.ones((1, H), jnp.float32); b2 = jnp.zeros((1, H), jnp.float32)

    params = (Wq, bq, Wk, bk, wg, Wp, bp, g1, b1, Wf, bf, g2, b2)

    out = ea_attention(x, params)
    out = jax.block_until_ready(out)

    ref = ea_attention_ref(x, params)
    assert out.shape == (B, S, H)
    assert jnp.allclose(out, ref, atol=1e-4, rtol=1e-4), "mismatch vs reference"

    print("KERNEL_OK")
</pallas_src>

<mosaic_0001>
module attributes {stable_mosaic.version = 11 : i64} {
  func.func @ea_attention_kernel(%arg0: i32, %arg1: memref<2x8x32xf32, #tpu.memory_space<vmem>>, %arg2: memref<32x64xf32, #tpu.memory_space<vmem>>, %arg3: memref<32x32xf32, #tpu.memory_space<vmem>>, %arg4: memref<32x32xf32, #tpu.memory_space<vmem>>, %arg5: memref<9x32xf32, #tpu.memory_space<vmem>>, %arg6: memref<2x8x32xf32, #tpu.memory_space<vmem>>) attributes {dimension_semantics = [#tpu.dimension_semantics<parallel>], iteration_bounds = array<i64: 1>, scalar_prefetch = 0 : i64, scratch_operands = 0 : i64, tpu.core_type = #tpu.core_type<tc>, window_params = [{transform_indices = @transform_0, window_bounds = array<i64: 2, 8, 32>}, {pipeline_mode = #tpu.pipeline_mode<synchronous>, transform_indices = @transform_1, window_bounds = array<i64: 32, 64>}, {pipeline_mode = #tpu.pipeline_mode<synchronous>, transform_indices = @transform_2, window_bounds = array<i64: 32, 32>}, {pipeline_mode = #tpu.pipeline_mode<synchronous>, transform_indices = @transform_3, window_bounds = array<i64: 32, 32>}, {pipeline_mode = #tpu.pipeline_mode<synchronous>, transform_indices = @transform_4, window_bounds = array<i64: 9, 32>}, {transform_indices = @transform_5, window_bounds = array<i64: 2, 8, 32>}]} {
    %c0 = arith.constant 0 : index
    %c0_0 = arith.constant 0 : index
    %c0_1 = arith.constant 0 : index
    %0 = vector.load %arg1[%c0, %c0_0, %c0_1] : memref<2x8x32xf32, #tpu.memory_space<vmem>>, vector<2x8x32xf32>
    %1 = vector.shape_cast %0 : vector<2x8x32xf32> to vector<16x32xf32>
    %c0_2 = arith.constant 0 : index
    %c0_3 = arith.constant 0 : index
    %2 = vector.load %arg5[%c0_2, %c0_3] : memref<9x32xf32, #tpu.memory_space<vmem>>, vector<9x32xf32>
    %3 = vector.extract_strided_slice %2 {offsets = [0, 0], sizes = [1, 32], strides = [1, 1]} : vector<9x32xf32> to vector<1x32xf32>
    %4 = vector.extract_strided_slice %2 {offsets = [1, 0], sizes = [1, 32], strides = [1, 1]} : vector<9x32xf32> to vector<1x32xf32>
    %5 = vector.extract_strided_slice %2 {offsets = [2, 0], sizes = [1, 32], strides = [1, 1]} : vector<9x32xf32> to vector<1x32xf32>
    %6 = vector.extract_strided_slice %2 {offsets = [3, 0], sizes = [1, 32], strides = [1, 1]} : vector<9x32xf32> to vector<1x32xf32>
    %7 = vector.extract_strided_slice %2 {offsets = [4, 0], sizes = [1, 32], strides = [1, 1]} : vector<9x32xf32> to vector<1x32xf32>
    %8 = vector.extract_strided_slice %2 {offsets = [5, 0], sizes = [1, 32], strides = [1, 1]} : vector<9x32xf32> to vector<1x32xf32>
    %9 = vector.extract_strided_slice %2 {offsets = [6, 0], sizes = [1, 32], strides = [1, 1]} : vector<9x32xf32> to vector<1x32xf32>
    %10 = vector.extract_strided_slice %2 {offsets = [7, 0], sizes = [1, 32], strides = [1, 1]} : vector<9x32xf32> to vector<1x32xf32>
    %11 = vector.extract_strided_slice %2 {offsets = [8, 0], sizes = [1, 32], strides = [1, 1]} : vector<9x32xf32> to vector<1x32xf32>
    %c0_4 = arith.constant 0 : index
    %c0_5 = arith.constant 0 : index
    %12 = vector.load %arg2[%c0_4, %c0_5] : memref<32x64xf32, #tpu.memory_space<vmem>>, vector<32x64xf32>
    %cst = arith.constant dense<0.000000e+00> : vector<16x64xf32>
    %13 = tpu.matmul %1, %12, %cst {dimension_numbers = #tpu.dot_dimension_numbers<[1], [0], [0], [1], [0, 0, 1, 1], [], []>} : vector<16x32xf32>, vector<32x64xf32>, vector<16x64xf32> -> vector<16x64xf32>
    %14 = vector.extract_strided_slice %13 {offsets = [0, 0], sizes = [16, 32], strides = [1, 1]} : vector<16x64xf32> to vector<16x32xf32>
    %15 = vector.broadcast %3 : vector<1x32xf32> to vector<16x32xf32>
    %16 = arith.addf %14, %15 : vector<16x32xf32>
    %17 = vector.extract_strided_slice %13 {offsets = [0, 32], sizes = [16, 32], strides = [1, 1]} : vector<16x64xf32> to vector<16x32xf32>
    %18 = vector.broadcast %4 : vector<1x32xf32> to vector<16x32xf32>
    %19 = arith.addf %17, %18 : vector<16x32xf32>
    %20 = arith.mulf %16, %16 : vector<16x32xf32>
    %cst_6 = arith.constant dense<0.000000e+00> : vector<16xf32>
    %21 = vector.multi_reduction <add>, %20, %cst_6 [1] : vector<16x32xf32> to vector<16xf32>
    %22 = vector.shape_cast %21 : vector<16xf32> to vector<16x1xf32>
    %cst_7 = arith.constant 1.000000e-24 : f32
    %23 = vector.broadcast %cst_7 : f32 to vector<16x1xf32>
    %24 = arith.maximumf %22, %23 : vector<16x1xf32>
    %25 = math.rsqrt %24 : vector<16x1xf32>
    %26 = vector.broadcast %25 : vector<16x1xf32> to vector<16x32xf32>
    %27 = arith.mulf %16, %26 : vector<16x32xf32>
    %28 = arith.mulf %19, %19 : vector<16x32xf32>
    %cst_8 = arith.constant dense<0.000000e+00> : vector<16xf32>
    %29 = vector.multi_reduction <add>, %28, %cst_8 [1] : vector<16x32xf32> to vector<16xf32>
    %30 = vector.shape_cast %29 : vector<16xf32> to vector<16x1xf32>
    %cst_9 = arith.constant 1.000000e-24 : f32
    %31 = vector.broadcast %cst_9 : f32 to vector<16x1xf32>
    %32 = arith.maximumf %30, %31 : vector<16x1xf32>
    %33 = math.rsqrt %32 : vector<16x1xf32>
    %34 = vector.broadcast %33 : vector<16x1xf32> to vector<16x32xf32>
    %35 = arith.mulf %19, %34 : vector<16x32xf32>
    %cst_10 = arith.constant 5.000000e-01 : f32
    %36 = vector.broadcast %cst_10 : f32 to vector<16x32xf32>
    %37 = arith.mulf %36, %27 : vector<16x32xf32>
    %cst_11 = arith.constant 0.707106769 : f32
    %38 = vector.broadcast %cst_11 : f32 to vector<16x32xf32>
    %39 = arith.mulf %27, %38 : vector<16x32xf32>
    %40 = math.erf %39 : vector<16x32xf32>
    %cst_12 = arith.constant 1.000000e+00 : f32
    %41 = vector.broadcast %cst_12 : f32 to vector<16x32xf32>
    %42 = arith.addf %41, %40 : vector<16x32xf32>
    %43 = arith.mulf %37, %42 : vector<16x32xf32>
    %44 = vector.shape_cast %43 : vector<16x32xf32> to vector<2x8x32xf32>
    %45 = vector.shape_cast %35 : vector<16x32xf32> to vector<2x8x32xf32>
    %46 = vector.shape_cast %5 : vector<1x32xf32> to vector<1x1x32xf32>
    %47 = vector.broadcast %46 : vector<1x1x32xf32> to vector<2x8x32xf32>
    %48 = arith.mulf %44, %47 : vector<2x8x32xf32>
    %cst_13 = arith.constant dense<0.000000e+00> : vector<2x8xf32>
    %49 = vector.multi_reduction <add>, %48, %cst_13 [2] : vector<2x8x32xf32> to vector<2x8xf32>
    %50 = vector.shape_cast %49 : vector<2x8xf32> to vector<2x8x1xf32>
    %cst_14 = arith.constant 0.176776692 : f32
    %51 = vector.broadcast %cst_14 : f32 to vector<2x8x1xf32>
    %52 = arith.mulf %50, %51 : vector<2x8x1xf32>
    %53 = arith.mulf %52, %52 : vector<2x8x1xf32>
    %cst_15 = arith.constant dense<0.000000e+00> : vector<2x1xf32>
    %54 = vector.multi_reduction <add>, %53, %cst_15 [1] : vector<2x8x1xf32> to vector<2x1xf32>
    %55 = vector.shape_cast %54 : vector<2x1xf32> to vector<2x1x1xf32>
    %cst_16 = arith.constant 1.000000e-24 : f32
    %56 = vector.broadcast %cst_16 : f32 to vector<2x1x1xf32>
    %57 = arith.maximumf %55, %56 : vector<2x1x1xf32>
    %58 = math.rsqrt %57 : vector<2x1x1xf32>
    %59 = vector.broadcast %58 : vector<2x1x1xf32> to vector<2x8x1xf32>
    %60 = arith.mulf %52, %59 : vector<2x8x1xf32>
    %61 = vector.broadcast %60 : vector<2x8x1xf32> to vector<2x8x32xf32>
    %62 = arith.mulf %61, %44 : vector<2x8x32xf32>
    %cst_17 = arith.constant dense<0.000000e+00> : vector<2x32xf32>
    %63 = vector.multi_reduction <add>, %62, %cst_17 [1] : vector<2x8x32xf32> to vector<2x32xf32>
    %64 = vector.shape_cast %63 : vector<2x32xf32> to vector<2x1x32xf32>
    %65 = vector.broadcast %64 : vector<2x1x32xf32> to vector<2x8x32xf32>
    %66 = arith.mulf %65, %45 : vector<2x8x32xf32>
    %67 = vector.shape_cast %66 : vector<2x8x32xf32> to vector<16x32xf32>
    %c0_18 = arith.constant 0 : index
    %c0_19 = arith.constant 0 : index
    %68 = vector.load %arg3[%c0_18, %c0_19] : memref<32x32xf32, #tpu.memory_space<vmem>>, vector<32x32xf32>
    %cst_20 = arith.constant dense<0.000000e+00> : vector<16x32xf32>
    %69 = tpu.matmul %67, %68, %cst_20 {dimension_numbers = #tpu.dot_dimension_numbers<[1], [0], [0], [1], [0, 0, 1, 1], [], []>} : vector<16x32xf32>, vector<32x32xf32>, vector<16x32xf32> -> vector<16x32xf32>
    %70 = vector.broadcast %6 : vector<1x32xf32> to vector<16x32xf32>
    %71 = arith.addf %69, %70 : vector<16x32xf32>
    %cst_21 = arith.constant dense<0.000000e+00> : vector<16xf32>
    %72 = vector.multi_reduction <add>, %1, %cst_21 [1] : vector<16x32xf32> to vector<16xf32>
    %73 = vector.shape_cast %72 : vector<16xf32> to vector<16x1xf32>
    %cst_22 = arith.constant 3.200000e+01 : f32
    %74 = vector.broadcast %cst_22 : f32 to vector<16x1xf32>
    %75 = arith.divf %73, %74 : vector<16x1xf32>
    %76 = vector.broadcast %75 : vector<16x1xf32> to vector<16x32xf32>
    %77 = arith.subf %1, %76 : vector<16x32xf32>
    %78 = arith.mulf %77, %77 : vector<16x32xf32>
    %cst_23 = arith.constant dense<0.000000e+00> : vector<16xf32>
    %79 = vector.multi_reduction <add>, %78, %cst_23 [1] : vector<16x32xf32> to vector<16xf32>
    %80 = vector.shape_cast %79 : vector<16xf32> to vector<16x1xf32>
    %cst_24 = arith.constant 3.200000e+01 : f32
    %81 = vector.broadcast %cst_24 : f32 to vector<16x1xf32>
    %82 = arith.divf %80, %81 : vector<16x1xf32>
    %83 = vector.broadcast %75 : vector<16x1xf32> to vector<16x32xf32>
    %84 = arith.subf %1, %83 : vector<16x32xf32>
    %cst_25 = arith.constant 9.99999996E-13 : f32
    %85 = vector.broadcast %cst_25 : f32 to vector<16x1xf32>
    %86 = arith.addf %82, %85 : vector<16x1xf32>
    %87 = math.rsqrt %86 : vector<16x1xf32>
    %88 = vector.broadcast %87 : vector<16x1xf32> to vector<16x32xf32>
    %89 = arith.mulf %84, %88 : vector<16x32xf32>
    %90 = vector.broadcast %7 : vector<1x32xf32> to vector<16x32xf32>
    %91 = arith.mulf %89, %90 : vector<16x32xf32>
    %92 = vector.broadcast %8 : vector<1x32xf32> to vector<16x32xf32>
    %93 = arith.addf %91, %92 : vector<16x32xf32>
    %94 = arith.mulf %71, %93 : vector<16x32xf32>
    %c0_26 = arith.constant 0 : index
    %c0_27 = arith.constant 0 : index
    %95 = vector.load %arg4[%c0_26, %c0_27] : memref<32x32xf32, #tpu.memory_space<vmem>>, vector<32x32xf32>
    %cst_28 = arith.constant dense<0.000000e+00> : vector<16x32xf32>
    %96 = tpu.matmul %94, %95, %cst_28 {dimension_numbers = #tpu.dot_dimension_numbers<[1], [0], [0], [1], [0, 0, 1, 1], [], []>} : vector<16x32xf32>, vector<32x32xf32>, vector<16x32xf32> -> vector<16x32xf32>
    %97 = vector.broadcast %9 : vector<1x32xf32> to vector<16x32xf32>
    %98 = arith.addf %96, %97 : vector<16x32xf32>
    %99 = arith.addf %98, %1 : vector<16x32xf32>
    %cst_29 = arith.constant dense<0.000000e+00> : vector<16xf32>
    %100 = vector.multi_reduction <add>, %99, %cst_29 [1] : vector<16x32xf32> to vector<16xf32>
    %101 = vector.shape_cast %100 : vector<16xf32> to vector<16x1xf32>
    %cst_30 = arith.constant 3.200000e+01 : f32
    %102 = vector.broadcast %cst_30 : f32 to vector<16x1xf32>
    %103 = arith.divf %101, %102 : vector<16x1xf32>
    %104 = vector.broadcast %103 : vector<16x1xf32> to vector<16x32xf32>
    %105 = arith.subf %99, %104 : vector<16x32xf32>
    %106 = arith.mulf %105, %105 : vector<16x32xf32>
    %cst_31 = arith.constant dense<0.000000e+00> : vector<16xf32>
    %107 = vector.multi_reduction <add>, %106, %cst_31 [1] : vector<16x32xf32> to vector<16xf32>
    %108 = vector.shape_cast %107 : vector<16xf32> to vector<16x1xf32>
    %cst_32 = arith.constant 3.200000e+01 : f32
    %109 = vector.broadcast %cst_32 : f32 to vector<16x1xf32>
    %110 = arith.divf %108, %109 : vector<16x1xf32>
    %111 = vector.broadcast %103 : vector<16x1xf32> to vector<16x32xf32>
    %112 = arith.subf %99, %111 : vector<16x32xf32>
    %cst_33 = arith.constant 9.99999996E-13 : f32
    %113 = vector.broadcast %cst_33 : f32 to vector<16x1xf32>
    %114 = arith.addf %110, %113 : vector<16x1xf32>
    %115 = math.rsqrt %114 : vector<16x1xf32>
    %116 = vector.broadcast %115 : vector<16x1xf32> to vector<16x32xf32>
    %117 = arith.mulf %112, %116 : vector<16x32xf32>
    %118 = vector.broadcast %10 : vector<1x32xf32> to vector<16x32xf32>
    %119 = arith.mulf %117, %118 : vector<16x32xf32>
    %120 = vector.broadcast %11 : vector<1x32xf32> to vector<16x32xf32>
    %121 = arith.addf %119, %120 : vector<16x32xf32>
    %122 = vector.shape_cast %121 : vector<16x32xf32> to vector<2x8x32xf32>
    %c0_34 = arith.constant 0 : index
    %c0_35 = arith.constant 0 : index
    %c0_36 = arith.constant 0 : index
    %123 = vector.load %arg6[%c0_34, %c0_35, %c0_36] : memref<2x8x32xf32, #tpu.memory_space<vmem>>, vector<2x8x32xf32>
    tpu.vector_store %arg6[%c0_34, %c0_35, %c0_36], %122 {strides = array<i32>} : memref<2x8x32xf32, #tpu.memory_space<vmem>>, vector<2x8x32xf32>,
    return
  }
  func.func @transform_0(%arg0: i32) -> (i32, i32, i32) {
    %c0_i32 = arith.constant 0 : i32
    %c0_i32_0 = arith.constant 0 : i32
    %c0_i32_1 = arith.constant 0 : i32
    return %arg0, %c0_i32, %c0_i32_0 : i32, i32, i32
  }
  func.func @transform_1(%arg0: i32) -> (i32, i32) {
    %c0_i32 = arith.constant 0 : i32
    %c0_i32_0 = arith.constant 0 : i32
    %c0_i32_1 = arith.constant 0 : i32
    return %c0_i32, %c0_i32_0 : i32, i32
  }
  func.func @transform_2(%arg0: i32) -> (i32, i32) {
    %c0_i32 = arith.constant 0 : i32
    %c0_i32_0 = arith.constant 0 : i32
    %c0_i32_1 = arith.constant 0 : i32
    return %c0_i32, %c0_i32_0 : i32, i32
  }
  func.func @transform_3(%arg0: i32) -> (i32, i32) {
    %c0_i32 = arith.constant 0 : i32
    %c0_i32_0 = arith.constant 0 : i32
    %c0_i32_1 = arith.constant 0 : i32
    return %c0_i32, %c0_i32_0 : i32, i32
  }
  func.func @transform_4(%arg0: i32) -> (i32, i32) {
    %c0_i32 = arith.constant 0 : i32
    %c0_i32_0 = arith.constant 0 : i32
    %c0_i32_1 = arith.constant 0 : i32
    return %c0_i32, %c0_i32_0 : i32, i32
  }
  func.func @transform_5(%arg0: i32) -> (i32, i32, i32) {
    %c0_i32 = arith.constant 0 : i32
    %c0_i32_0 = arith.constant 0 : i32
    %c0_i32_1 = arith.constant 0 : i32
    return %arg0, %c0_i32, %c0_i32_0 : i32, i32, i32
  }
}

</mosaic_0001>

<bundles_post_ra>
// kernel: tpu_custom_call.1
= control target key start
LH: loop header
LB: loop body
LE: loop exit
PB: predicated region body
PF: predicated region fallthrough
CT: control target
= control target key end

     0   :  { %10 = vsyncpa [#allocation3], 0  ;;  %s946_s0 = inlined_call_operand.hbm [shape: f32[2,8,32], index: 0, kind: input, shape index: {}]   ;;  %s947_s1 = inlined_call_operand.hbm [shape: f32[32,64], index: 1, kind: input, shape index: {}]   ;;  %s948_s2 = inlined_call_operand.hbm [shape: f32[32,32], index: 2, kind: input, shape index: {}]   ;;  %s949_s3 = inlined_call_operand.hbm [shape: f32[32,32], index: 3, kind: input, shape index: {}]   ;;  %s950_s4 = inlined_call_operand.hbm [shape: f32[9,32], index: 4, kind: input, shape index: {}]   ;;  %s951_s5 = inlined_call_operand.hbm [shape: f32[2,8,32], index: 5, kind: output, shape index: {}]  }
   0x1   :  { %11 = vsyncpa [#allocation6], 0 }
   0x2   :  { %12 = vsyncpa [#allocation9], 0 }
   0x3   :  { %13 = vsyncpa [#allocation4], 0  ;;  %s801_s18 = smov [#allocation5]   ;;  %s802_s20 = smov [#allocation8]  }
   0x4   :  { %s31_s19 = sshll.u32 %s801_s18, 4  ;;  %s55_s21 = sshll.u32 %s802_s20, 4  ;;  %s32_s19 = int_to_ptr.vmem [resolvable:$true] %s31_s19  ;;  %s56_s21 = int_to_ptr.vmem [resolvable:$true] %s55_s21 }
   0x5   :  { %s681_s22 = scalar_lea.vmem %s32_s19, 512  ;;  %p686_p1 = scmp.lt.s32.totalorder %s32_s19, %s32_s19 }
   0x6   :  { %p682_p0 = scmp.ne.s32.totalorder %s32_s19, %s681_s22  ;;  %p687_p2 = scmp.lt.s32.totalorder %s681_s22, %s681_s22 }
   0x8   :  { %p688_p3 = por %p687_p2, %p686_p1 }
   0xa   :  { %p689_p4 = pnand %p688_p3, %p682_p0 }
   0xc   :  { %692 = shalt.err (!%p689_p4)
}
   0xd   :  { %s803_s23 = smov 128   ;;  %s804_s24 = smov 8  }
   0xe   :  { %37 = dma.hbm_to_vmem [thread:$0]  %s947_s1, 512, %s32_s19, [#allocation6], %s803_s23, %s803_s23, %s804_s24  }
   0xf   :  { %s701_s27 = scalar_lea.vmem %s56_s21, 512  ;;  %p706_p6 = scmp.lt.s32.totalorder %s56_s21, %s56_s21 }
  0x10   :  { %p702_p5 = scmp.ne.s32.totalorder %s56_s21, %s701_s27  ;;  %p707_p7 = scmp.lt.s32.totalorder %s701_s27, %s701_s27 }
  0x12   :  { %p708_p8 = por %p707_p7, %p706_p6 }
  0x14   :  { %p709_p9 = pnand %p708_p8, %p702_p5 }
  0x16   :  { %712 = shalt.err (!%p709_p9)
}
  0x17   :  { %61 = dma.hbm_to_vmem [thread:$0]  %s949_s3, 512, %s56_s21, [#allocation9], %s803_s23, %s803_s23, %s804_s24  }
  0x18   :  { %s805_s30 = smov [#allocation2]   ;;  %s806_s7 = smov [#allocation7]  }
  0x19   :  { %s19_s6 = sshll.u32 %s805_s30, 4  ;;  %s43_s8 = sshll.u32 %s806_s7, 4  ;;  %s20_s6 = int_to_ptr.vmem [resolvable:$true] %s19_s6  ;;  %s44_s8 = int_to_ptr.vmem [resolvable:$true] %s43_s8 }
  0x1a   :  { %s721_s1 = scalar_lea.vmem %s20_s6, 256  ;;  %p726_p11 = scmp.lt.s32.totalorder %s20_s6, %s20_s6 }
  0x1b   :  { %p722_p10 = scmp.ne.s32.totalorder %s20_s6, %s721_s1  ;;  %p727_p12 = scmp.lt.s32.totalorder %s721_s1, %s721_s1 }
  0x1d   :  { %p728_p13 = por %p727_p12, %p726_p11 }
  0x1f   :  { %p729_p0 = pnand %p728_p13, %p722_p10 }
  0x21   :  { %732 = shalt.err (!%p729_p0)
}
  0x22   :  { %25 = dma.hbm_to_vmem [thread:$0]  %s946_s0, 256, %s20_s6, [#allocation3], %s803_s23, %s803_s23, %s804_s24  }
  0x23   :  { %s741_s3 = scalar_lea.vmem %s44_s8, 512  ;;  %p746_p2 = scmp.lt.s32.totalorder %s44_s8, %s44_s8 }
  0x24   :  { %p742_p1 = scmp.ne.s32.totalorder %s44_s8, %s741_s3  ;;  %p747_p3 = scmp.lt.s32.totalorder %s741_s3, %s741_s3 }
  0x26   :  { %p748_p4 = por %p747_p3, %p746_p2 }
  0x28   :  { %p749_p5 = pnand %p748_p4, %p742_p1 }
  0x2a   :  { %752 = shalt.err (!%p749_p5)
}
  0x2b   :  { %49 = dma.hbm_to_vmem [thread:$0]  %s948_s2, 512, %s44_s8, [#allocation6], %s803_s23, %s803_s23, %s804_s24  }
  0x2c   :  { %s807_s13 = smov [#allocation10]  }
  0x2d   :  { %s67_s14 = sshll.u32 %s807_s13, 4  ;;  %s68_s14 = int_to_ptr.vmem [resolvable:$true] %s67_s14 }
  0x2e   :  { %s761_s15 = scalar_lea.vmem %s68_s14, 256  ;;  %p766_p7 = scmp.lt.s32.totalorder %s68_s14, %s68_s14 }
  0x2f   :  { %p762_p6 = scmp.ne.s32.totalorder %s68_s14, %s761_s15  ;;  %p767_p8 = scmp.lt.s32.totalorder %s761_s15, %s761_s15 }
  0x31   :  { %p768_p9 = por %p767_p8, %p766_p7 }
  0x33   :  { %p769_p10 = pnand %p768_p9, %p762_p6 }
  0x35   :  { %772 = shalt.err (!%p769_p10)
}
  0x36   :  { %73 = dma.hbm_to_vmem [thread:$0]  %s950_s4, 256, %s68_s14, [#allocation9], %s803_s23, %s803_s23, %s804_s24  }
  0x37   :  { %793 = dma.done.wait [#allocation3], 256  }
  0x38   :  { %794 = vsyncadd [#allocation3], 4294967040 }
  0x39   :  { %795 = dma.done.wait [#allocation6], 1024  }
  0x3a   :  { %796 = vsyncadd [#allocation6], 4294966272 }
  0x3b   :  { %797 = dma.done.wait [#allocation9], 768  }
  0x3c   :  { %798 = vsyncadd [#allocation9], 4294966528  ;;  %v179_v0 = vlaneseq  ;;  %vm97_vm0 = vcmask 261120   ;;  %v96_v3 = vld [vmem:[#allocation5 + $0x18] sm:$0xff]  ;;  %v95_v4 = vld [vmem:[#allocation5 + $0x10] sm:$0xff]  ;;  %s808_s2 = smov 32  }
  0x3d   :  { %606 = vmatprep.subr.mxu0 %v96_v3  ;;  %v874_v5 = vld [vmem:[#allocation2] sm:$0xff]  ;;  %v94_v6 = vld [vmem:[#allocation5 + $0x8] sm:$0xff]  ;;  %v878_v7 = vld [vmem:[#allocation10] sm:$0xff]  ;;  %s809_s4 = smov 96   ;;  %s810_s17 = smov [#allocation11]  }
  0x3e   :  { %v871_v1 = vshrl.u32 %v179_v0, 7  ;;  %607 = vmatpush3.msra.mxu0 %v96_v3  ;;  %614 = vmatprep.mubr.msk.f32.mxu0 %vm97_vm0, %v874_v5  ;;  %v93_v9 = vld [vmem:[#allocation5] sm:$0xff]  ;;  %v881_v10 = vld [vmem:[#allocation2 + $0x8] sm:$0xff]  ;;  %v303_v59 = vld [vmem:[#allocation7 + $0x10] sm:$0xff]  ;;  %s567_s18 = sshll.u32 %s810_s17, 4  ;;  %s568_s18 = int_to_ptr.vmem [resolvable:$true] %s567_s18 }
  0x3f   :  { %608 = vmatprep.subr.mxu0 %v95_v4  ;;  %v304_v54 = vld [vmem:[#allocation7 + $0x18] sm:$0xff]  ;;  %v302_v60 = vld [vmem:[#allocation7 + $0x8] sm:$0xff]  ;;  %v301_v61 = vld [vmem:[#allocation7] sm:$0xff]  ;;  %s773_s19 = scalar_lea.vmem %s568_s18, 256  ;;  %p778_p12 = scmp.lt.s32.totalorder %s568_s18, %s568_s18 }
  0x40   :  { %v187_v2 = vsub.s32 1, %v871_v1  ;;  %609 = vmatpush3.msra.mxu0 %v95_v4  ;;  %v181_v11 = vsub.s32 0, %v871_v1  ;;  %v243_v41 = vsub.s32 2, %v871_v1  ;;  %617 = vmatprep.subr.mxu1 %v304_v54  ;;  %v390_v4 = vsel %vm97_vm0, %v874_v5, 0.0  ;;  %p774_p11 = scmp.ne.s32.totalorder %s568_s18, %s773_s19  ;;  %p779_p13 = scmp.lt.s32.totalorder %s773_s19, %s773_s19 }
  0x41   :  { %610 = vmatprep.subr.mxu0 %v94_v6  ;;  %618 = vmatpush3.msra.mxu1 %v304_v54 }
  0x42   :  { %v188_v8 = vrot.slane %v878_v7, %v187_v2  ;;  %611 = vmatpush3.msra.mxu0 %v94_v6  ;;  %v182_v12 = vrot.slane %v878_v7, %v181_v11  ;;  %v244_v48 = vrot.slane %v878_v7, %v243_v41  ;;  %619 = vmatprep.subr.mxu1 %v303_v59  ;;  %p780_p0 = por %p779_p13, %p778_p12 }
  0x43   :  { %612 = vmatprep.subr.mxu0 %v93_v9  ;;  %620 = vmatpush3.msra.mxu1 %v303_v59 }
  0x44   :  { %190 = vrot.lane.b32.xlu0 %v188_v8, %s808_s2  ;;  %613 = vmatpush3.msra.mxu0 %v93_v9  ;;  %p781_p1 = pnand %p780_p0, %p774_p11 }
  0x45   :  { %615 = vmatmul.mubr.msk.f32.vlgmr.msra.gmra.mxu0 %vm97_vm0, %v881_v10  ;;  %621 = vmatprep.subr.mxu1 %v302_v60 }
  0x46   :  { %622 = vmatpush3.msra.mxu1 %v302_v60 }
  0x47   :  { %623 = vmatprep.subr.mxu1 %v301_v61 }
  0x48   :  { %624 = vmatpush3.msra.mxu1 %v301_v61 }
  0xb6   :  { %v191_v21 = vpop.permute.xlu0 %190 }
 0x105   :  { %v616_v13 = vpop.f32.mrf.mxu0 }
 0x106   :  { %v184_v14 = vadd.f32 %v616_v13, %v182_v12  ;;  %v889_v23 = vadd.f32 %v616_v13, %v191_v21 }
 0x107   :  { %v170_v15 = vpop.f32.mrf.mxu0 }
 0x108   :  { %v183_v16 = vadd.f32 %v182_v12, %v170_v15  ;;  %v196_v17 = vmul.f32 %v184_v14, %v184_v14  ;;  %v193_v22 = vadd.f32 %v191_v21, %v170_v15  ;;  %v210_v25 = vmul.f32 %v889_v23, %v889_v23 }
 0x109   :  { %v393_v12 = vsel %vm97_vm0, %v881_v10, 0.0 }
 0x10a   :  { %v200_v18 = vsel %vm97_vm0, %v196_v17, 0.0  ;;  %v195_v19 = vmul.f32 %v183_v16, %v183_v16  ;;  %v209_v24 = vmul.f32 %v193_v22, %v193_v22 }
 0x10b   :  { %201 = vadd.xlane.f32.xlu1 %v200_v18 }
 0x10c   :  { %v197_v20 = vsel %vm97_vm0, %v195_v19, 0.0 }
 0x10d   :  { %198 = vadd.xlane.f32.xlu0 %v197_v20 }
 0x11c   :  { %213 = vrot.lane.b32.xlu1 %v209_v24, %s809_s4 }
 0x120   :  { %215 = vrot.lane.b32.xlu1 %v210_v25, %s809_s4 }
 0x194   :  { %v202_v26 = vpop.xlane.xlu1 %201 }
 0x195   :  { %v204_v27 = vmax.f32 %v202_v26, 1e-24 }
 0x196   :  { %v199_v28 = vpop.xlane.xlu0 %198 }
 0x197   :  { %649 = vrsqrt.f32 %v204_v27  ;;  %v203_v29 = vmax.f32 %v199_v28, 1e-24 }
 0x198   :  { %v214_v30 = vpop.permute.xlu1 %213 }
 0x199   :  { %651 = vrsqrt.f32 %v203_v29  ;;  %v219_v31 = vsel %vm97_vm0, %v214_v30, 0.0 }
 0x19a   :  { %220 = vadd.xlane.f32.xlu1 %v219_v31 }
 0x19c   :  { %v216_v32 = vpop.permute.xlu1 %215 }
 0x19d   :  { %v222_v33 = vsel %vm97_vm0, %v216_v32, 0.0 }
 0x19e   :  { %223 = vadd.xlane.f32.xlu0 %v222_v33 }
 0x1a4   :  { %v650_v34 = vpop.eup %649 }
 0x1a5   :  { %v208_v35 = vmul.f32 %v650_v34, %v184_v14 }
 0x1a6   :  { %v652_v36 = vpop.eup %651 }
 0x1a7   :  { %v207_v37 = vmul.f32 %v652_v36, %v183_v16  ;;  %v234_v38 = vmul.f32 0.70710677, %v208_v35  ;;  %v232_v46 = vmul.f32 0.5, %v208_v35 }
 0x1a9   :  { %v233_v39 = vmul.f32 0.70710677, %v207_v37  ;;  %653 = verf.f32 %v234_v38  ;;  %v231_v44 = vmul.f32 0.5, %v207_v37 }
 0x1ab   :  { %655 = verf.f32 %v233_v39 }
 0x1b6   :  { %v654_v40 = vpop.eup %653 }
 0x1b7   :  { %v238_v42 = vadd.f32 1.0, %v654_v40 }
 0x1b8   :  { %v656_v43 = vpop.eup %655 }
 0x1b9   :  { %v237_v45 = vadd.f32 1.0, %v656_v43  ;;  %v899_v49 = vmul.f32 %v238_v42, %v232_v46 }
 0x1bb   :  { %v239_v47 = vmul.f32 %v237_v45, %v231_v44  ;;  %v246_v52 = vmul.f32 %v244_v48, %v899_v49 }
 0x1bd   :  { %v245_v50 = vmul.f32 %v244_v48, %v239_v47  ;;  %v250_v53 = vsel %vm97_vm0, %v246_v52, 0.0 }
 0x1bf   :  { %v247_v51 = vsel %vm97_vm0, %v245_v50, 0.0 }
 0x1c0   :  { %248 = vadd.xlane.f32.xlu0 %v247_v51 }
 0x1c4   :  { %251 = vadd.xlane.f32.xlu0 %v250_v53 }
 0x223   :  { %v221_v55 = vpop.xlane.xlu1 %220 }
 0x224   :  { %v225_v56 = vmax.f32 %v221_v55, 1e-24 }
 0x226   :  { %657 = vrsqrt.f32 %v225_v56 }
 0x227   :  { %v224_v57 = vpop.xlane.xlu0 %223 }
 0x228   :  { %v226_v58 = vmax.f32 %v224_v57, 1e-24 }
 0x22a   :  { %659 = vrsqrt.f32 %v226_v58 }
 0x233   :  { %v658_v62 = vpop.eup %657 }
 0x234   :  { %v229_v63 = vmul.f32 %v658_v62, %v193_v22  ;;  %v434_v62 = vld [vmem:[#allocation8 + $0x18] sm:$0xff] }
 0x235   :  { %628 = vmatprep.subr.mxu0 %v434_v62 }
 0x236   :  { %293 = vrot.lane.b32.xlu0 %v229_v63, %s809_s4  ;;  %v433_v63 = vld [vmem:[#allocation8 + $0x10] sm:$0xff]  ;;  %629 = vmatpush3.msra.mxu0 %v434_v62 }
 0x237   :  { %v660_v0 = vpop.eup %659  ;;  %630 = vmatprep.subr.mxu0 %v433_v63 }
 0x238   :  { %v230_v2 = vmul.f32 %v660_v0, %v889_v23  ;;  %v432_v0 = vld [vmem:[#allocation8 + $0x8] sm:$0xff]  ;;  %631 = vmatpush3.msra.mxu0 %v433_v63 }
 0x239   :  { %632 = vmatprep.subr.mxu0 %v432_v0 }
 0x23a   :  { %295 = vrot.lane.b32.xlu1 %v230_v2, %s809_s4  ;;  %v431_v2 = vld [vmem:[#allocation8] sm:$0xff]  ;;  %633 = vmatpush3.msra.mxu0 %v432_v0 }
 0x23b   :  { %634 = vmatprep.subr.mxu0 %v431_v2 }
 0x23c   :  { %635 = vmatpush3.msra.mxu0 %v431_v2 }
 0x249   :  { %v249_v3 = vpop.xlane.xlu0 %248 }
 0x24a   :  { %v253_v6 = vmul.f32 0.17677669, %v249_v3 }
 0x24c   :  { %v255_v9 = vmul.f32 %v253_v6, %v253_v6 }
 0x24d   :  { %v252_v8 = vpop.xlane.xlu0 %251 }
 0x24e   :  { %v254_v11 = vmul.f32 0.17677669, %v252_v8  ;;  %v257_v13 = vrot.slane %v255_v9, 4 }
 0x250   :  { %v256_v14 = vmul.f32 %v254_v11, %v254_v11  ;;  %v258_v15 = vadd.f32 %v257_v13, %v255_v9  ;;  %v425_v13 = vsub.s32 5, %v871_v1 }
 0x252   :  { %v263_v16 = vrot.slane %v256_v14, 4  ;;  %v259_v17 = vrot.slane %v258_v15, 2 }
 0x254   :  { %v264_v18 = vadd.f32 %v263_v16, %v256_v14  ;;  %v260_v19 = vadd.f32 %v259_v17, %v258_v15  ;;  %v307_v15 = vsub.s32 3, %v871_v1 }
 0x255   :  { %391 = vadd.xlane.f32.xlu0 %v390_v4 }
 0x256   :  { %v265_v20 = vrot.slane %v264_v18, 2  ;;  %v261_v21 = vrot.slane %v260_v19, 1 }
 0x258   :  { %v266_v22 = vadd.f32 %v265_v20, %v264_v18  ;;  %v262_v23 = vadd.f32 %v261_v21, %v260_v19  ;;  %v426_v19 = vrot.slane %v878_v7, %v425_v13  ;;  %v308_v21 = vrot.slane %v878_v7, %v307_v15 }
 0x25a   :  { %v267_v24 = vrot.slane %v266_v22, 1  ;;  %v269_v25 = vmax.f32 %v262_v23, 1e-24 }
 0x25c   :  { %v268_v26 = vadd.f32 %v267_v24, %v266_v22  ;;  %661 = vrsqrt.f32 %v269_v25 }
 0x25e   :  { %394 = vadd.xlane.f32.xlu1 %v393_v12  ;;  %v270_v27 = vmax.f32 %v268_v26, 1e-24  ;;  %v419_v12 = vsub.s32 4, %v871_v1 }
 0x260   :  { %663 = vrsqrt.f32 %v270_v27  ;;  %v420_v16 = vrot.slane %v878_v7, %v419_v12 }
 0x269   :  { %v662_v28 = vpop.eup %661 }
 0x26a   :  { %v273_v29 = vmul.f32 %v662_v28, %v253_v6 }
 0x26c   :  { %v275_v31 = vmul.f32 %v273_v29, %v239_v47 }
 0x26d   :  { %v664_v30 = vpop.eup %663 }
 0x26e   :  { %v274_v32 = vmul.f32 %v664_v30, %v254_v11  ;;  %v277_v33 = vsel %vm97_vm0, %v275_v31, 0.0 }
 0x26f   :  { %v278_v35 = vrot.slane %v277_v33, 4 }
 0x270   :  { %v276_v34 = vmul.f32 %v274_v32, %v899_v49  ;;  %v437_v32 = vsub.s32 6, %v871_v1 }
 0x271   :  { %v279_v38 = vadd.f32 %v278_v35, %v277_v33 }
 0x272   :  { %v284_v36 = vsel %vm97_vm0, %v276_v34, 0.0  ;;  %v438_v33 = vrot.slane %v878_v7, %v437_v32 }
 0x273   :  { %v285_v37 = vrot.slane %v284_v36, 4  ;;  %v280_v39 = vrot.slane %v279_v38, 2 }
 0x275   :  { %v286_v40 = vadd.f32 %v285_v37, %v284_v36  ;;  %v281_v41 = vadd.f32 %v280_v39, %v279_v38 }
 0x277   :  { %v287_v42 = vrot.slane %v286_v40, 2  ;;  %v282_v43 = vrot.slane %v281_v41, 1 }
 0x279   :  { %v288_v44 = vadd.f32 %v287_v42, %v286_v40  ;;  %v283_v45 = vadd.f32 %v282_v43, %v281_v41 }
 0x27b   :  { %v289_v46 = vrot.slane %v288_v44, 1 }
 0x27d   :  { %v290_v50 = vadd.f32 %v289_v46, %v288_v44 }
 0x2a8   :  { %v294_v48 = vpop.permute.xlu0 %293 }
 0x2a9   :  { %v299_v47 = vmul.f32 %v294_v48, %v283_v45 }
 0x2ab   :  { %625 = vmatprep.mubr.msk.f32.mxu1 %vm97_vm0, %v299_v47 }
 0x2ac   :  { %v296_v51 = vpop.permute.xlu1 %295 }
 0x2ad   :  { %v300_v49 = vmul.f32 %v296_v51, %v290_v50 }
 0x2af   :  { %626 = vmatmul.mubr.msk.f32.vlgmr.msra.gmra.mxu1 %vm97_vm0, %v300_v49 }
 0x2de   :  { %v392_v52 = vpop.xlane.xlu0 %391 }
 0x2df   :  { %v397_v53 = vmul.f32 0.03125, %v392_v52 }
 0x2e1   :  { %v399_v54 = vsub.f32 %v874_v5, %v397_v53 }
 0x2e3   :  { %v401_v55 = vmul.f32 %v399_v54, %v399_v54 }
 0x2e5   :  { %v403_v56 = vsel %vm97_vm0, %v401_v55, 0.0 }
 0x2e6   :  { %404 = vadd.xlane.f32.xlu0 %v403_v56  ;;  %v550_v56 = vsub.s32 7, %v871_v1 }
 0x2e7   :  { %v395_v57 = vpop.xlane.xlu1 %394 }
 0x2e8   :  { %v398_v58 = vmul.f32 0.03125, %v395_v57  ;;  %v551_v57 = vrot.slane %v878_v7, %v550_v56 }
 0x2ea   :  { %v400_v59 = vsub.f32 %v881_v10, %v398_v58 }
 0x2ec   :  { %v402_v60 = vmul.f32 %v400_v59, %v400_v59 }
 0x2ee   :  { %v406_v61 = vsel %vm97_vm0, %v402_v60, 0.0  ;;  %v587_v60 = vld [vmem:[#allocation10 + $0x8] ss:$0 sm:$0xff] }
 0x2ef   :  { %407 = vadd.xlane.f32.xlu0 %v406_v61 }
 0x36f   :  { %v405_v3 = vpop.xlane.xlu0 %404  ;;  %v627_v14 = vpop.f32.mrf.mxu1 }
 0x370   :  { %v409_v4 = vmul.f32 0.03125, %v405_v3  ;;  %v387_v29 = vadd.f32 %v627_v14, %v308_v21 }
 0x371   :  { %v381_v20 = vpop.f32.mrf.mxu1 }
 0x372   :  { %v411_v6 = vadd.f32 1e-12, %v409_v4  ;;  %v382_v23 = vadd.f32 %v381_v20, %v308_v21 }
 0x374   :  { %665 = vrsqrt.f32 %v411_v6 }
 0x378   :  { %v408_v8 = vpop.xlane.xlu0 %407 }
 0x379   :  { %v410_v9 = vmul.f32 0.03125, %v408_v8 }
 0x37b   :  { %v412_v11 = vadd.f32 1e-12, %v410_v9 }
 0x37d   :  { %667 = vrsqrt.f32 %v412_v11 }
 0x381   :  { %v666_v17 = vpop.eup %665 }
 0x382   :  { %v415_v18 = vmul.f32 %v666_v17, %v399_v54 }
 0x384   :  { %v421_v22 = vmul.f32 %v420_v16, %v415_v18 }
 0x386   :  { %v427_v24 = vadd.f32 %v426_v19, %v421_v22 }
 0x388   :  { %v429_v25 = vmul.f32 %v427_v24, %v382_v23 }
 0x38a   :  { %v668_v26 = vpop.eup %667  ;;  %636 = vmatprep.mubr.msk.f32.mxu0 %vm97_vm0, %v429_v25 }
 0x38b   :  { %v416_v27 = vmul.f32 %v668_v26, %v400_v59 }
 0x38d   :  { %v422_v28 = vmul.f32 %v420_v16, %v416_v27 }
 0x38f   :  { %v428_v30 = vadd.f32 %v426_v19, %v422_v28 }
 0x391   :  { %v430_v31 = vmul.f32 %v428_v30, %v387_v29 }
 0x393   :  { %637 = vmatmul.mubr.msk.f32.vlgmr.msra.gmra.mxu0 %vm97_vm0, %v430_v31 }
 0x453   :  { %v638_v34 = vpop.f32.mrf.mxu0 }
 0x454   :  { %v517_v36 = vadd.f32 %v638_v34, %v438_v33 }
 0x455   :  { %v511_v35 = vpop.f32.mrf.mxu0 }
 0x456   :  { %v512_v37 = vadd.f32 %v511_v35, %v438_v33  ;;  %v521_v40 = vadd.f32 %v517_v36, %v881_v10 }
 0x458   :  { %v520_v38 = vadd.f32 %v512_v37, %v874_v5  ;;  %v525_v41 = vsel %vm97_vm0, %v521_v40, 0.0 }
 0x45a   :  { %v522_v39 = vsel %vm97_vm0, %v520_v38, 0.0 }
 0x45b   :  { %523 = vadd.xlane.f32.xlu0 %v522_v39 }
 0x45f   :  { %526 = vadd.xlane.f32.xlu0 %v525_v41 }
 0x4e4   :  { %v524_v42 = vpop.xlane.xlu0 %523 }
 0x4e5   :  { %v528_v43 = vmul.f32 0.03125, %v524_v42 }
 0x4e7   :  { %v530_v44 = vsub.f32 %v520_v38, %v528_v43 }
 0x4e8   :  { %v527_v45 = vpop.xlane.xlu0 %526 }
 0x4e9   :  { %v529_v46 = vmul.f32 0.03125, %v527_v45  ;;  %v532_v48 = vmul.f32 %v530_v44, %v530_v44 }
 0x4eb   :  { %v531_v47 = vsub.f32 %v521_v40, %v529_v46  ;;  %v534_v50 = vsel %vm97_vm0, %v532_v48, 0.0 }
 0x4ec   :  { %535 = vadd.xlane.f32.xlu1 %v534_v50 }
 0x4ed   :  { %v533_v51 = vmul.f32 %v531_v47, %v531_v47 }
 0x4ef   :  { %v537_v5 = vsel %vm97_vm0, %v533_v51, 0.0 }
 0x4f0   :  { %538 = vadd.xlane.f32.xlu0 %v537_v5 }
 0x575   :  { %v536_v49 = vpop.xlane.xlu1 %535 }
 0x576   :  { %v540_v10 = vmul.f32 0.03125, %v536_v49 }
 0x578   :  { %v542_v52 = vadd.f32 1e-12, %v540_v10 }
 0x579   :  { %v539_v53 = vpop.xlane.xlu0 %538 }
 0x57a   :  { %669 = vrsqrt.f32 %v542_v52  ;;  %v541_v54 = vmul.f32 0.03125, %v539_v53 }
 0x57c   :  { %v543_v55 = vadd.f32 1e-12, %v541_v54 }
 0x57e   :  { %671 = vrsqrt.f32 %v543_v55 }
 0x587   :  { %v670_v58 = vpop.eup %669 }
 0x588   :  { %v546_v59 = vmul.f32 %v670_v58, %v530_v44 }
 0x58a   :  { %v552_v61 = vmul.f32 %v551_v57, %v546_v59 }
 0x58b   :  { %v672_v62 = vpop.eup %671 }
 0x58c   :  { %v547_v63 = vmul.f32 %v672_v62, %v531_v47  ;;  %v558_v0 = vadd.f32 %v587_v60, %v552_v61 }
 0x58e   :  { %v553_v2 = vmul.f32 %v551_v57, %v547_v63  ;;  %560 = vst.msk [vmem:[#allocation11] sm:$0xff] %vm97_vm0, %v558_v0 }
 0x590   :  { %v559_v3 = vadd.f32 %v587_v60, %v553_v2 }
 0x592   :  { %561 = vst.msk [vmem:[#allocation11 + $0x8] sm:$0xff] %vm97_vm0, %v559_v3 }
 0x593   :  { %784 = shalt.err (!%p781_p1)
}
 0x594   :  { %573 = dma.vmem_to_hbm [thread:$0]  %s568_s18, 256, %s951_s5, [#allocation4], %s803_s23, %s803_s23, %s804_s24  }
 0x595   :  { %799 = dma.done.wait [#allocation4], 256  }
 0x596   :  { %800 = vsyncadd [#allocation4], 4294967040 }
 0x597   :  { %577 = vsyncpa [#allocation3], 1 }
 0x598   :  { %578 = vsyncpa [#allocation6], 1 }
 0x599   :  { %579 = vsyncpa [#allocation9], 1 }
 0x59a   :  { %580 = vsyncpa [#allocation4], 1 }

</bundles_post_ra>
